<compile_context>
chip_gen: v5e
topology: v5e:2x2
jax: 0.10.0
libtpu: 0.0.40
codegen_flags: <defaults>
</compile_context>

<pallas_src>
import functools

import jax
import jax.numpy as jnp
from jax.experimental import pallas as pl
from jax.experimental.pallas import tpu as pltpu


# ---------------------------------------------------------------------------
# Fused kernel: per-(batch, class) counts and NLL partial sums.
# ---------------------------------------------------------------------------
def _wce_partials_kernel(p_ref, t_ref, cnt_ref, nll_ref, acc_cnt, acc_nll,
                         *, hw, tile_hw):
    j = pl.program_id(1)

    @pl.when(j == 0)
    def _():
        acc_cnt[...] = jnp.zeros_like(acc_cnt)
        acc_nll[...] = jnp.zeros_like(acc_nll)

    logits = p_ref[0].astype(jnp.float32)          # (C, T)  classes x pixels
    tgt = t_ref[0]                                 # (1, T)  int32
    C, T = logits.shape

    # Numerically stable log-sum-exp over the class (sublane) axis.
    m = jnp.max(logits, axis=0, keepdims=True)                       # (1, T)
    lse = m + jnp.log(jnp.sum(jnp.exp(logits - m), axis=0, keepdims=True))

    cls = jax.lax.broadcasted_iota(jnp.int32, (C, T), 0)
    onehot = (cls == tgt).astype(jnp.float32)                        # (C, T)
    nll_c = onehot * (lse - logits)                                  # (C, T)

    if hw % tile_hw != 0:
        # Mask the overhang of the last (partial) tile; `where` also kills any
        # inf/nan produced from the padded garbage logits.
        col = jax.lax.broadcasted_iota(jnp.int32, (1, T), 1) + j * tile_hw
        valid = col < hw                                             # (1, T)
        onehot = jnp.where(valid, onehot, 0.0)
        nll_c = jnp.where(valid, nll_c, 0.0)

    # Pure element-wise accumulation (no per-step cross-lane reduce).
    acc_cnt[...] += onehot
    acc_nll[...] += nll_c

    @pl.when(j == pl.num_programs(1) - 1)
    def _():
        cnt_ref[...] = jnp.sum(acc_cnt[...], axis=1, keepdims=True)[None]
        nll_ref[...] = jnp.sum(acc_nll[...], axis=1, keepdims=True)[None]


# ---------------------------------------------------------------------------
# Wrapper
# ---------------------------------------------------------------------------
def _pick_tile_hw(hw, c, itemsize):
    # ~2 MiB per predict block keeps 2x(input)+scratch well inside even the
    # v5e 16 MiB default-scoped VMEM (and v7x's 64 MiB physical VMEM).
    budget = 2 * 1024 * 1024
    t = max(128, (budget // max(1, c * itemsize)) // 128 * 128)
    t = min(t, 16384)
    return hw if hw <= t else t


@functools.partial(jax.jit, static_argnames=("num_classes",))
def weighted_cross_entropy_loss(predict, target, *, num_classes):
    """Mirrors WeightedCrossEntropyLoss.forward(predict, target)."""
    if target.ndim == predict.ndim:
        target = target[:, 0]

    N, C = predict.shape[0], predict.shape[1]
    assert C == num_classes
    hw = 1
    for d in predict.shape[2:]:
        hw *= d

    # Free reshapes only — keep the native NCHW layout (classes on sublanes,
    # pixels on lanes).  No dtype upcast in HBM: the kernel upcasts per tile.
    pred = predict.reshape(N, C, hw)
    tgt = target.reshape(N, 1, hw).astype(jnp.int32)

    tile_hw = _pick_tile_hw(hw, C, pred.dtype.itemsize)
    n_tiles = pl.cdiv(hw, tile_hw)

    kernel = functools.partial(_wce_partials_kernel, hw=hw, tile_hw=tile_hw)

    counts_p, nll_p = pl.pallas_call(
        kernel,
        out_shape=(
            jax.ShapeDtypeStruct((N, C, 1), jnp.float32),
            jax.ShapeDtypeStruct((N, C, 1), jnp.float32),
        ),
        grid_spec=pltpu.PrefetchScalarGridSpec(
            num_scalar_prefetch=0,
            grid=(N, n_tiles),
            in_specs=[
                pl.BlockSpec((1, C, tile_hw), lambda n, j: (n, 0, j)),
                pl.BlockSpec((1, 1, tile_hw), lambda n, j: (n, 0, j)),
            ],
            out_specs=[
                pl.BlockSpec((1, C, 1), lambda n, j: (n, 0, 0)),
                pl.BlockSpec((1, C, 1), lambda n, j: (n, 0, 0)),
            ],
            scratch_shapes=[
                pltpu.VMEM((C, tile_hw), jnp.float32),
                pltpu.VMEM((C, tile_hw), jnp.float32),
            ],
        ),
        compiler_params=pltpu.CompilerParams(
            dimension_semantics=("parallel", "arbitrary")),
    )(pred, tgt)

    # Tiny scalar glue: class weights + weighted mean reduction.
    # NOTE: counts are accumulated in f32; exact up to ~16.7M pixels/class.
    counts = jnp.sum(counts_p, axis=(0, 2))        # (C,)
    nll_sum = jnp.sum(nll_p, axis=(0, 2))          # (C,)
    weight = 1.0 - counts / jnp.sum(counts)
    num = jnp.dot(weight, nll_sum)                 # sum_i w[y_i] * nll_i
    den = jnp.dot(weight, counts)                  # sum_i w[y_i]
    return num / den


# ---------------------------------------------------------------------------
# Pure-JAX reference for verification.
# ---------------------------------------------------------------------------
def _reference_loss(predict, target, num_classes):
    if target.ndim == predict.ndim:
        target = target[:, 0]
    counts = jnp.stack(
        [jnp.sum(target == c).astype(jnp.float32) for c in range(num_classes)])
    weight = 1.0 - counts / jnp.sum(counts)
    C = predict.shape[1]
    logits = jnp.moveaxis(predict, 1, -1).reshape(-1, C).astype(jnp.float32)
    t = target.reshape(-1).astype(jnp.int32)
    logp = jax.nn.log_softmax(logits, axis=-1)
    nll = -jnp.take_along_axis(logp, t[:, None], axis=-1)[:, 0]
    w_i = weight[t]
    return jnp.sum(w_i * nll) / jnp.sum(w_i)


if __name__ == "__main__":
    num_classes = 4
    N, C, H, W = 2, num_classes, 16, 16

    key = jax.random.PRNGKey(0)
    kp, kt = jax.random.split(key)
    predict = jax.random.normal(kp, (N, C, H, W), dtype=jnp.float32)
    target = jax.random.randint(kt, (N, 1, H, W), 0, num_classes,
                                dtype=jnp.int32)

    loss = jax.block_until_ready(
        weighted_cross_entropy_loss(predict, target, num_classes=num_classes))
    ref = jax.block_until_ready(_reference_loss(predict, target, num_classes))
    assert jnp.allclose(loss, ref, rtol=1e-5, atol=1e-6), (loss, ref)

    # Secondary check: shape forcing a multi-tile grid with a partial tail
    # tile (exercises the in-kernel tail-masking path, no wrapper padding).
    H2, W2 = 135, 135
    kp2, kt2 = jax.random.split(jax.random.PRNGKey(1))
    predict2 = jax.random.normal(kp2, (N, C, H2, W2), dtype=jnp.float32)
    target2 = jax.random.randint(kt2, (N, 1, H2, W2), 0, num_classes,
                                 dtype=jnp.int32)
    loss2 = jax.block_until_ready(
        weighted_cross_entropy_loss(predict2, target2,
                                    num_classes=num_classes))
    ref2 = jax.block_until_ready(_reference_loss(predict2, target2,
                                                 num_classes))
    assert jnp.allclose(loss2, ref2, rtol=1e-5, atol=1e-5), (loss2, ref2)

    print("KERNEL_OK")
</pallas_src>

<mosaic_0001>
module attributes {stable_mosaic.version = 11 : i64} {
  func.func @_wce_partials_kernel(%arg0: i32, %arg1: i32, %arg2: memref<1x4x256xf32, #tpu.memory_space<vmem>>, %arg3: memref<1x1x256xi32, #tpu.memory_space<vmem>>, %arg4: memref<1x4x1xf32, #tpu.memory_space<vmem>>, %arg5: memref<1x4x1xf32, #tpu.memory_space<vmem>>, %arg6: memref<4x256xf32, #tpu.memory_space<vmem>>, %arg7: memref<4x256xf32, #tpu.memory_space<vmem>>) attributes {dimension_semantics = [#tpu.dimension_semantics<parallel>, #tpu.dimension_semantics<arbitrary>], iteration_bounds = array<i64: 2, 1>, scalar_prefetch = 0 : i64, scratch_operands = 2 : i64, tpu.core_type = #tpu.core_type<tc>, window_params = [{transform_indices = @transform_0, window_bounds = array<i64: 1, 4, 256>}, {transform_indices = @transform_1, window_bounds = array<i64: 1, 1, 256>}, {transform_indices = @transform_2, window_bounds = array<i64: 1, 4, 1>}, {transform_indices = @transform_3, window_bounds = array<i64: 1, 4, 1>}]} {
    %c0_i32 = arith.constant 0 : i32
    %0 = arith.cmpi eq, %arg1, %c0_i32 : i32
    %1 = arith.extui %0 : i1 to i32
    %c0_i32_0 = arith.constant 0 : i32
    %2 = arith.cmpi ne, %1, %c0_i32_0 : i32
    scf.if %2 {
      %cst_17 = arith.constant 0.000000e+00 : f32
      %33 = vector.broadcast %cst_17 : f32 to vector<4x256xf32>
      %c0_18 = arith.constant 0 : index
      %c0_19 = arith.constant 0 : index
      %34 = vector.load %arg6[%c0_18, %c0_19] : memref<4x256xf32, #tpu.memory_space<vmem>>, vector<4x256xf32>
      tpu.vector_store %arg6[%c0_18, %c0_19], %33 {strides = array<i32>} : memref<4x256xf32, #tpu.memory_space<vmem>>, vector<4x256xf32>,
      %cst_20 = arith.constant 0.000000e+00 : f32
      %35 = vector.broadcast %cst_20 : f32 to vector<4x256xf32>
      %c0_21 = arith.constant 0 : index
      %c0_22 = arith.constant 0 : index
      %36 = vector.load %arg7[%c0_21, %c0_22] : memref<4x256xf32, #tpu.memory_space<vmem>>, vector<4x256xf32>
      tpu.vector_store %arg7[%c0_21, %c0_22], %35 {strides = array<i32>} : memref<4x256xf32, #tpu.memory_space<vmem>>, vector<4x256xf32>,
    } else {
    }
    %c0 = arith.constant 0 : index
    %c0_1 = arith.constant 0 : index
    %c0_2 = arith.constant 0 : index
    %3 = vector.load %arg2[%c0, %c0_1, %c0_2] : memref<1x4x256xf32, #tpu.memory_space<vmem>>, vector<1x4x256xf32>
    %4 = vector.shape_cast %3 : vector<1x4x256xf32> to vector<4x256xf32>
    %c0_3 = arith.constant 0 : index
    %c0_4 = arith.constant 0 : index
    %c0_5 = arith.constant 0 : index
    %5 = vector.load %arg3[%c0_3, %c0_4, %c0_5] : memref<1x1x256xi32, #tpu.memory_space<vmem>>, vector<1x1x256xi32>
    %6 = vector.shape_cast %5 : vector<1x1x256xi32> to vector<1x256xi32>
    %cst = arith.constant dense<0xFF800000> : vector<256xf32>
    %7 = vector.multi_reduction <maximumf>, %4, %cst [0] : vector<4x256xf32> to vector<256xf32>
    %8 = vector.shape_cast %7 : vector<256xf32> to vector<1x256xf32>
    %9 = vector.broadcast %8 : vector<1x256xf32> to vector<4x256xf32>
    %10 = arith.subf %4, %9 : vector<4x256xf32>
    %11 = math.exp %10 : vector<4x256xf32>
    %cst_6 = arith.constant dense<0.000000e+00> : vector<256xf32>
    %12 = vector.multi_reduction <add>, %11, %cst_6 [0] : vector<4x256xf32> to vector<256xf32>
    %13 = vector.shape_cast %12 : vector<256xf32> to vector<1x256xf32>
    %14 = math.log %13 : vector<1x256xf32>
    %15 = arith.addf %8, %14 : vector<1x256xf32>
    %16 = tpu.iota {dimensions = array<i32: 0>} : vector<4x256xi32>
    %17 = vector.broadcast %6 : vector<1x256xi32> to vector<4x256xi32>
    %18 = arith.cmpi eq, %16, %17 : vector<4x256xi32>
    %19 = arith.extui %18 : vector<4x256xi1> to vector<4x256xi32>
    %20 = arith.sitofp %19 : vector<4x256xi32> to vector<4x256xf32>
    %21 = vector.broadcast %15 : vector<1x256xf32> to vector<4x256xf32>
    %22 = arith.subf %21, %4 : vector<4x256xf32>
    %23 = arith.mulf %20, %22 : vector<4x256xf32>
    %c0_7 = arith.constant 0 : index
    %c0_8 = arith.constant 0 : index
    %24 = vector.load %arg6[%c0_7, %c0_8] : memref<4x256xf32, #tpu.memory_space<vmem>>, vector<4x256xf32>
    %25 = arith.addf %24, %20 : vector<4x256xf32>
    %c0_9 = arith.constant 0 : index
    %c0_10 = arith.constant 0 : index
    %26 = vector.load %arg6[%c0_9, %c0_10] : memref<4x256xf32, #tpu.memory_space<vmem>>, vector<4x256xf32>
    tpu.vector_store %arg6[%c0_9, %c0_10], %25 {strides = array<i32>} : memref<4x256xf32, #tpu.memory_space<vmem>>, vector<4x256xf32>,
    %c0_11 = arith.constant 0 : index
    %c0_12 = arith.constant 0 : index
    %27 = vector.load %arg7[%c0_11, %c0_12] : memref<4x256xf32, #tpu.memory_space<vmem>>, vector<4x256xf32>
    %28 = arith.addf %27, %23 : vector<4x256xf32>
    %c0_13 = arith.constant 0 : index
    %c0_14 = arith.constant 0 : index
    %29 = vector.load %arg7[%c0_13, %c0_14] : memref<4x256xf32, #tpu.memory_space<vmem>>, vector<4x256xf32>
    tpu.vector_store %arg7[%c0_13, %c0_14], %28 {strides = array<i32>} : memref<4x256xf32, #tpu.memory_space<vmem>>, vector<4x256xf32>,
    %c0_i32_15 = arith.constant 0 : i32
    %30 = arith.cmpi eq, %arg1, %c0_i32_15 : i32
    %31 = arith.extui %30 : i1 to i32
    %c0_i32_16 = arith.constant 0 : i32
    %32 = arith.cmpi ne, %31, %c0_i32_16 : i32
    scf.if %32 {
      %c0_17 = arith.constant 0 : index
      %c0_18 = arith.constant 0 : index
      %33 = vector.load %arg6[%c0_17, %c0_18] : memref<4x256xf32, #tpu.memory_space<vmem>>, vector<4x256xf32>
      %cst_19 = arith.constant dense<0.000000e+00> : vector<4xf32>
      %34 = vector.multi_reduction <add>, %33, %cst_19 [1] : vector<4x256xf32> to vector<4xf32>
      %35 = vector.shape_cast %34 : vector<4xf32> to vector<4x1xf32>
      %36 = vector.shape_cast %35 : vector<4x1xf32> to vector<1x4x1xf32>
      %c0_20 = arith.constant 0 : index
      %c0_21 = arith.constant 0 : index
      %c0_22 = arith.constant 0 : index
      %37 = vector.load %arg4[%c0_20, %c0_21, %c0_22] : memref<1x4x1xf32, #tpu.memory_space<vmem>>, vector<1x4x1xf32>
      tpu.vector_store %arg4[%c0_20, %c0_21, %c0_22], %36 {strides = array<i32>} : memref<1x4x1xf32, #tpu.memory_space<vmem>>, vector<1x4x1xf32>,
      %c0_23 = arith.constant 0 : index
      %c0_24 = arith.constant 0 : index
      %38 = vector.load %arg7[%c0_23, %c0_24] : memref<4x256xf32, #tpu.memory_space<vmem>>, vector<4x256xf32>
      %cst_25 = arith.constant dense<0.000000e+00> : vector<4xf32>
      %39 = vector.multi_reduction <add>, %38, %cst_25 [1] : vector<4x256xf32> to vector<4xf32>
      %40 = vector.shape_cast %39 : vector<4xf32> to vector<4x1xf32>
      %41 = vector.shape_cast %40 : vector<4x1xf32> to vector<1x4x1xf32>
      %c0_26 = arith.constant 0 : index
      %c0_27 = arith.constant 0 : index
      %c0_28 = arith.constant 0 : index
      %42 = vector.load %arg5[%c0_26, %c0_27, %c0_28] : memref<1x4x1xf32, #tpu.memory_space<vmem>>, vector<1x4x1xf32>
      tpu.vector_store %arg5[%c0_26, %c0_27, %c0_28], %41 {strides = array<i32>} : memref<1x4x1xf32, #tpu.memory_space<vmem>>, vector<1x4x1xf32>,
    } else {
    }
    return
  }
  func.func @transform_0(%arg0: i32, %arg1: i32) -> (i32, i32, i32) {
    %c0_i32 = arith.constant 0 : i32
    %c0_i32_0 = arith.constant 0 : i32
    return %arg0, %c0_i32, %arg1 : i32, i32, i32
  }
  func.func @transform_1(%arg0: i32, %arg1: i32) -> (i32, i32, i32) {
    %c0_i32 = arith.constant 0 : i32
    %c0_i32_0 = arith.constant 0 : i32
    return %arg0, %c0_i32, %arg1 : i32, i32, i32
  }
  func.func @transform_2(%arg0: i32, %arg1: i32) -> (i32, i32, i32) {
    %c0_i32 = arith.constant 0 : i32
    %c0_i32_0 = arith.constant 0 : i32
    %c0_i32_1 = arith.constant 0 : i32
    return %arg0, %c0_i32, %c0_i32_0 : i32, i32, i32
  }
  func.func @transform_3(%arg0: i32, %arg1: i32) -> (i32, i32, i32) {
    %c0_i32 = arith.constant 0 : i32
    %c0_i32_0 = arith.constant 0 : i32
    %c0_i32_1 = arith.constant 0 : i32
    return %arg0, %c0_i32, %c0_i32_0 : i32, i32, i32
  }
}

</mosaic_0001>

<bundles_post_ra>
// kernel: squeeze.1
= control target key start
LH: loop header
LB: loop body
LE: loop exit
PB: predicated region body
PF: predicated region fallthrough
CT: control target
= control target key end

     0   :  { %2 = vsyncpa [#allocation1], 0  ;;  %s121_s8 = smov [#allocation0]   ;;  %s154_s0 = inlined_call_operand.hbm [shape: s32[2,1,16,16], index: 0, kind: input, shape index: {}]   ;;  %s155_s1 = inlined_call_operand.vmem [shape: s32[2,1,256], index: 1, kind: output, shape index: {}]  }
   0x1   :  { %s6_s0 = sshll.u32 %s154_s0, 4  ;;  %s8_s9 = sshll.u32 %s121_s8, 4  ;;  %s7_s0 = int_to_ptr.hbm [resolvable:$true] %s6_s0  ;;  %s9_s9 = int_to_ptr.vmem [resolvable:$true] %s8_s9 }
   0x2   :  { %11 = dma.hbm_to_vmem [thread:$0]  %s7_s0, 512, %s9_s9, [#allocation1]  }
   0x3   :  { %119 = dma.done.wait [#allocation1], 512  }
   0x4   :  { %120 = vsyncadd [#allocation1], 4294966784  ;;  %v18_v0 = vld [vmem:[#allocation0 + $0x7] ss:$8 sm:$0xf]   ;;  %s122_s10 = smov 112  }
   0x5   :  { %v30_v1 = vld [vmem:[#allocation0 + $0x5] ss:$8 sm:$0xf]   ;;  %19 = vrot.lane.b32.xlu0 %v18_v0, %s122_s10  ;;  %s123_s11 = smov 80   ;;  %s124_s12 = smov 48   ;;  %vm15_vm0 = vcmask 130048  }
   0x6   :  { %31 = vrot.lane.b32.xlu1 %v30_v1, %s123_s11  ;;  %v42_v2 = vld [vmem:[#allocation0 + $0x3] ss:$8 sm:$0xf]   ;;  %v24_v3 = vld [vmem:[#allocation0 + $0x6] ss:$8 sm:$0xf]  }
   0x7   :  { %43 = vrot.lane.b32.xlu2 %v42_v2, %s124_s12  ;;  %v36_v4 = vld [vmem:[#allocation0 + $0x4] ss:$8 sm:$0xf]   ;;  %v48_v5 = vld [vmem:[#allocation0 + $0x2] ss:$8 sm:$0xf]  }
   0x8   :  { %s125_s13 = smov 96   ;;  %s126_s14 = smov 64   ;;  %v54_v6 = vld [vmem:[#allocation0 + $0x1] ss:$8 sm:$0xf]   ;;  %vm21_vm1 = vcmask 1048448  }
   0x9   :  { %s127_s15 = smov 32   ;;  %s128_s16 = smov 16   ;;  %v14_v7 = vld [vmem:[#allocation0] ss:$8 sm:$0xf]   ;;  %vm27_vm2 = vcmask 917248  }
   0xa   :  { %16 = vst.msk [vmem:[#allocation2] ss:$8 sm:$0xf] %vm15_vm0, %v14_v7   ;;  %vm33_vm3 = vcmask 786048   ;;  %vm39_vm4 = vcmask 654848   ;;  %vm45_vm5 = vcmask 523648  }
   0xb   :  { %vm51_vm6 = vcmask 392448   ;;  %vm57_vm7 = vcmask 261248  }
   0xd   :  { %25 = vrot.lane.b32.xlu0 %v24_v3, %s125_s13 }
   0xe   :  { %37 = vrot.lane.b32.xlu1 %v36_v4, %s126_s14 }
   0xf   :  { %49 = vrot.lane.b32.xlu2 %v48_v5, %s127_s15 }
  0x15   :  { %55 = vrot.lane.b32.xlu0 %v54_v6, %s128_s16 }
  0x61   :  { %v44_v8 = vpop.permute.xlu2 %43  }
  0x69   :  { %v50_v9 = vpop.permute.xlu2 %49  }
  0x77   :  { %v20_v10 = vpop.permute.xlu0 %19  }
  0x78   :  { %v32_v11 = vpop.permute.xlu1 %31   ;;  %22 = vst.msk [vmem:[#allocation2] ss:$8 sm:$0xf] %vm21_vm1, %v20_v10  }
  0x7f   :  { %v26_v12 = vpop.permute.xlu0 %25  }
  0x80   :  { %v38_v13 = vpop.permute.xlu1 %37   ;;  %28 = vst.msk [vmem:[#allocation2] ss:$8 sm:$0xf] %vm27_vm2, %v26_v12  }
  0x81   :  { %34 = vst.msk [vmem:[#allocation2] ss:$8 sm:$0xf] %vm33_vm3, %v32_v11  }
  0x82   :  { %40 = vst.msk [vmem:[#allocation2] ss:$8 sm:$0xf] %vm39_vm4, %v38_v13  }
  0x83   :  { %46 = vst.msk [vmem:[#allocation2] ss:$8 sm:$0xf] %vm45_vm5, %v44_v8  }
  0x84   :  { %52 = vst.msk [vmem:[#allocation2] ss:$8 sm:$0xf] %vm51_vm6, %v50_v9  }
  0x87   :  { %v56_v14 = vpop.permute.xlu0 %55  }
  0x88   :  { %58 = vst.msk [vmem:[#allocation2] ss:$8 sm:$0xf] %vm57_vm7, %v56_v14  }
  0x8f   :  { %v61_v15 = vld [vmem:[#allocation2] sm:$0x1]  ;;  %v66_v16 = vld [vmem:[#allocation2 + $0x8] sm:$0x1]  ;;  %v72_v17 = vld [vmem:[#allocation2 + $0x10] sm:$0x1] }
  0x90   :  { %64 = vst [vmem:[%s155_s1] sm:$0x1] %v61_v15  ;;  %v78_v18 = vld [vmem:[#allocation2 + $0x18] sm:$0x1] }
  0x91   :  { %84 = vst [vmem:[%s155_s1 + $0x1] sm:$0x1] %v66_v16 }
  0x92   :  { %85 = vst [vmem:[%s155_s1 + $0x2] sm:$0x1] %v72_v17 }
  0x93   :  { %86 = vst [vmem:[%s155_s1 + $0x3] sm:$0x1] %v78_v18 }
  0x94   :  { %83 = vsyncpa [#allocation1], 1 }

// kernel: weighted_cross_entropy_loss.1
= control target key start
LH: loop header
LB: loop body
LE: loop exit
PB: predicated region body
PF: predicated region fallthrough
CT: control target
= control target key end

     0   :  { %s573_s12 = smov 0   ;;  %s575_s13 = smov 0   ;;  %s628_s0 = inlined_call_operand.vmem [shape: f32[2,4,256], index: 0, kind: input, shape index: {}]   ;;  %s629_s1 = inlined_call_operand.vmem [shape: s32[2,1,256], index: 1, kind: input, shape index: {}]   ;;  %s630_s2 = inlined_call_operand.vmem [shape: f32[2,4,1], index: 2, kind: output, shape index: {0}]   ;;  %s631_s3 = inlined_call_operand.vmem [shape: f32[2,4,1], index: 3, kind: output, shape index: {1}]  }
   0x1   :  { %s577_s14 = smov 0  }
   0x2 LB: > { %s26_s15 = sadd.s32 1, %s546_s13  ;;  %p486_p0 = scmp.ge.s32.totalorder %s550_s14, 1  ;;  %s550_s14 = sphi %s577_s14, %s14_s14   ;;  %s546_s13 = sphi %s575_s13, %s633_s13   ;;  %s542_s12 = sphi %s573_s12, %s632_s12  }
   0x3   : > { %p28_p1 = scmp.ge.s32.totalorder %s26_s15, 2  ;;  %p175_p2 = scmp.lt.s32.totalorder %s550_s14, 3 }
   0x5   : > { %s635_s15 = smov (%p28_p1, %s26_s15), 0  ;;  %p176_p3 = pnand %p486_p0, %p175_p2 }
   0x6   : > { %p215_p4 = scmp.lt.s32.totalorder (!%p176_p3), %s542_s12, 1 }
   0x7   : > { %179 = sbr.rel (%p176_p3) target bundleno = 218 (0xda), region = 28 }
   0xc   : > { %s637_s12 = smov (!%p215_p4, %s542_s12), 1  ;;  %vm255_vm0 = vcmask 1043456   ;;  %v304_v21 = vlaneseq  ;;  %v552_v27 = vmov 0.0   ;;  %vm354_vm3 = vcmask 3072  }
   0xd   : > { %s496_s16 = sshll.u32 %s637_s12, 3  ;;  %s489_s20 = sshll.u32 %s637_s12, 1 }
   0xe   : > { %s222_s19 = scalar_lea.vmem %s628_s0, %s496_s16  ;;  %s231_s23 = scalar_lea.vmem %s629_s1, %s489_s20  ;;  %v305_v24 = vshrl.u32 %v304_v21, 7 }
   0xf   : > { %v247_v0 = vld [vmem:[%s222_s19] sm:$0xff]  ;;  %s490_s24 = sshll.u32 %s637_s12, 2 }
  0x10   : > { %250 = vst [vmem:[#allocation1] ss:$2 sm:$0xff] %v247_v0  ;;  %v248_v22 = vld [vmem:[%s231_s23] sm:$0x3]  ;;  %s236_s27 = scalar_lea.vmem %s630_s2, %s490_s24  ;;  %s240_s30 = scalar_lea.vmem %s631_s3, %s490_s24 }
  0x11   : > { %v307_v25 = vperm.slane %v248_v22, 1  ;;  %v306_v26 = vperm.slane %v248_v22, 0 }
  0x13   : > { %vm309_vm1 = vcmp.eq.s32.totalorder %v305_v24, %v307_v25  ;;  %vm308_vm2 = vcmp.eq.s32.totalorder %v305_v24, %v306_v26 }
  0x14   : > { %v493_v28 = vsel %vm309_vm1, 1.0, %v552_v27  ;;  %v492_v36 = vsel %vm308_vm2, 1.0, %v552_v27 }
  0x15   : > { %v326_v34 = vrot.slane %v493_v28, 4 }
  0x17   : > { %v251_v1 = vld.sshfl [vmem:[#allocation1] sm:$0xff pattern:$0x75316420]  ;;  %v252_v2 = vld.sshfl [vmem:[#allocation1 + $0x8] sm:$0xff pattern:$0x75316420]  ;;  %v327_v40 = vsel %vm255_vm0, %v492_v36, %v326_v34 }
  0x18   : > { %v256_v3 = vsel %vm255_vm0, %v251_v1, -inf  ;;  %v263_v4 = vsel %vm255_vm0, %v252_v2, -inf }
  0x19   : > { %v257_v5 = vrot.slane %v256_v3, 4  ;;  %v264_v6 = vrot.slane %v263_v4, 4 }
  0x1b   : > { %v258_v7 = vmax.f32 %v256_v3, %v257_v5  ;;  %v265_v8 = vmax.f32 %v263_v4, %v264_v6 }
  0x1d   : > { %v259_v9 = vrot.slane %v258_v7, 2  ;;  %v266_v10 = vrot.slane %v265_v8, 2 }
  0x1f   : > { %v260_v11 = vmax.f32 %v258_v7, %v259_v9  ;;  %v267_v12 = vmax.f32 %v265_v8, %v266_v10 }
  0x21   : > { %v261_v13 = vrot.slane %v260_v11, 1  ;;  %v268_v14 = vrot.slane %v267_v12, 1 }
  0x23   : > { %v262_v15 = vmax.f32 %v260_v11, %v261_v13  ;;  %v269_v16 = vmax.f32 %v267_v12, %v268_v14 }
  0x25   : > { %v272_v17 = vrot.slane %v269_v16, 4 }
  0x27   : > { %v273_v18 = vsel %vm255_vm0, %v262_v15, %v272_v17 }
  0x28   : > { %v275_v19 = vsub.f32 %v247_v0, %v273_v18 }
  0x2a   : > { %v276_v20 = vmul.f32 1.442695, %v275_v19 }
  0x2c   : > { %522 = vpow2.f32 %v276_v20 }
  0x32   : > { %v523_v23 = vpop.eup %522 }
  0x33   : > { %279 = vst [vmem:[#allocation1] ss:$2 sm:$0xff] %v523_v23 }
  0x3a   : > { %v280_v29 = vld.sshfl [vmem:[#allocation1] sm:$0xff pattern:$0x75316420]  ;;  %v281_v30 = vld.sshfl [vmem:[#allocation1 + $0x8] sm:$0xff pattern:$0x75316420] }
  0x3b   : > { %v291_v31 = vsel %vm255_vm0, %v281_v30, 0.0  ;;  %314 = vst [vmem:[#allocation1] ss:$2 sm:$0xff] %v247_v0  ;;  %v284_v32 = vsel %vm255_vm0, %v280_v29, 0.0 }
  0x3c   : > { %v292_v33 = vrot.slane %v291_v31, 4  ;;  %v285_v35 = vrot.slane %v284_v32, 4 }
  0x3e   : > { %v293_v37 = vadd.f32 %v292_v33, %v291_v31  ;;  %v286_v38 = vadd.f32 %v285_v35, %v284_v32 }
  0x40   : > { %v294_v39 = vrot.slane %v293_v37, 2  ;;  %v287_v41 = vrot.slane %v286_v38, 2 }
  0x42   : > { %v295_v42 = vadd.f32 %v294_v39, %v293_v37  ;;  %v315_v43 = vld.sshfl [vmem:[#allocation1] sm:$0xff pattern:$0x75316420]  ;;  %v316_v44 = vld.sshfl [vmem:[#allocation1 + $0x8] sm:$0xff pattern:$0x75316420]  ;;  %v288_v45 = vadd.f32 %v287_v41, %v286_v38 }
  0x43   : > { %344 = vst [vmem:[#allocation1] ss:$2 sm:$0xff] %v327_v40 }
  0x44   : > { %v296_v46 = vrot.slane %v295_v42, 1  ;;  %v289_v47 = vrot.slane %v288_v45, 1 }
  0x46   : > { %v297_v48 = vadd.f32 %v296_v46, %v295_v42  ;;  %v290_v49 = vadd.f32 %v289_v47, %v288_v45 }
  0x48   : > { %524 = vlog2.f32 %v297_v48 }
  0x49   : > { %526 = vlog2.f32 %v290_v49 }
  0x4a   : > { %v345_v50 = vld.sshfl [vmem:[#allocation1] sm:$0xff pattern:$0x75316420]  ;;  %v346_v51 = vld.sshfl [vmem:[#allocation1 + $0x8] sm:$0xff pattern:$0x75316420] }
  0x4b   : > { %v349_v52 = vsel %vm255_vm0, %v345_v50, 0.0  ;;  %v350_v53 = vsel %vm255_vm0, %v346_v51, 0.0 }
  0x4c   : > { %v351_v54 = vadd.f32 %v350_v53, %v349_v52 }
  0x4e   : > { %v525_v55 = vpop.eup %524  ;;  %352 = vadd.xlane.f32.xlu0 %v351_v54 }
  0x4f   : > { %v527_v56 = vpop.eup %526  ;;  %v301_v57 = vmul.f32 0.6931472, %v525_v55 }
  0x50   : > { %v299_v58 = vmul.f32 0.6931472, %v527_v56 }
  0x51   : > { %v303_v59 = vadd.f32 %v301_v57, %v269_v16 }
  0x52   : > { %v302_v60 = vadd.f32 %v299_v58, %v262_v15 }
  0x53   : > { %v320_v61 = vsub.f32 %v303_v59, %v316_v44 }
  0x54   : > { %v319_v62 = vsub.f32 %v302_v60, %v315_v43 }
  0x55   : > { %v322_v63 = vmul.f32 %v493_v28, %v320_v61 }
  0x56   : > { %v321_v0 = vmul.f32 %v492_v36, %v319_v62 }
  0x57   : > { %v334_v1 = vrot.slane %v322_v63, 4 }
  0x59   : > { %v335_v2 = vsel %vm255_vm0, %v321_v0, %v334_v1 }
  0x5a   : > { %358 = vst [vmem:[#allocation1] ss:$2 sm:$0xff] %v335_v2 }
  0x61   : > { %v359_v3 = vld.sshfl [vmem:[#allocation1] sm:$0xff pattern:$0x75316420]  ;;  %v360_v4 = vld.sshfl [vmem:[#allocation1 + $0x8] sm:$0xff pattern:$0x75316420] }
  0x62   : > { %v363_v5 = vsel %vm255_vm0, %v359_v3, 0.0  ;;  %v364_v6 = vsel %vm255_vm0, %v360_v4, 0.0 }
  0x63   : > { %v365_v7 = vadd.f32 %v364_v6, %v363_v5 }
  0x65   : > { %366 = vadd.xlane.f32.xlu0 %v365_v7 }
  0xc1   : > { %v353_v8 = vpop.xlane.xlu0 %352 }
  0xc2   : > { %355 = vst.msk [vmem:[%s236_s27] sm:$0xf] %vm354_vm3, %v353_v8 }
  0xd8   : > { %v367_v9 = vpop.xlane.xlu0 %366 }
  0xd9   : > { %368 = vst.msk [vmem:[%s240_s30] sm:$0xf] %vm354_vm3, %v367_v9 }
  0xda PF: > { %s14_s14 = sadd.s32 1, %s550_s14   ;;  %s632_s12 = smov %s546_s13 }
  0xdb   : > { %p11_p5 = scmp.ge.s32.totalorder %s14_s14, 4   ;;  %s633_s13 = smov %s635_s15 }
  0xdd   :  { %13 = sbr.rel (!%p11_p5) target bundleno = 2 (0x2), region = 81 }

</bundles_post_ra>
